<compile_context>
chip_gen: v5e
topology: v5e:2x2
jax: 0.10.0
libtpu: 0.0.40
codegen_flags: <defaults>
</compile_context>

<pallas_src>
import functools

import jax
import jax.numpy as jnp
from jax.experimental import pallas as pl
from jax.experimental.pallas import tpu as pltpu


def _round_up(x, m):
    return (x + m - 1) // m * m


def _classifier_kernel(emb_ref, w_ref, maskb_ref, gid_ref, params_ref,
                       num_ref, den_ref,
                       z_scr, num_acc, den_acc,
                       *, S, n_inner, chunk, bf16_mul):
    tile_s, T, E = emb_ref.shape
    G_pad = num_ref.shape[1]

    bias = params_ref[0]
    temp_words = params_ref[1]
    temp_subdocs = params_ref[2]

    c = pl.program_id(0)          # core-split axis ("parallel")
    i = pl.program_id(1)          # S-stream axis ("arbitrary": carries accumulation)

    @pl.when(i == 0)
    def _():
        num_acc[...] = jnp.zeros_like(num_acc)
        den_acc[...] = jnp.zeros_like(den_acc)

    # ---- Linear(E -> 1): VPU broadcast-multiply + cross-lane reduce over E. ----
    # Chunked over rows so f32 temporaries stay small and vreg/VMEM-bounded
    # instead of materializing a full (tile_s, T, E) f32 upcast of the block.
    w = w_ref[...].reshape(1, 1, E)
    if bf16_mul:
        w = w.astype(jnp.bfloat16)

    def _linear_chunk(k, carry):
        r0 = pl.multiple_of(k * chunk, chunk)
        e = emb_ref[pl.ds(r0, chunk), :, :]
        if bf16_mul:
            prod = (e * w).astype(jnp.float32)        # bf16 multiply, f32 reduce
        else:
            prod = e.astype(jnp.float32) * w
        z_scr[pl.ds(r0, chunk), :] = jnp.sum(prod, axis=-1) + bias
        return carry

    jax.lax.fori_loop(0, tile_s // chunk, _linear_chunk, 0, unroll=True)
    z = z_scr[...]                                     # (tile_s, T) float32

    # ---- Word pooling: masked, max-shifted softmax over tokens (torch.softmax). ----
    h = temp_words * z + maskb_ref[...].astype(jnp.float32)
    m = jnp.max(h, axis=1, keepdims=True)
    p = jnp.exp(h - m)
    inv = pl.reciprocal(jnp.sum(p, axis=1, keepdims=True), approx=False)
    z_words = jnp.sum(z * (p * inv), axis=1, keepdims=True)        # (tile_s, 1)

    # ---- Validity of the logical rows in this tile (ragged last tile and
    #      clamped overflow tiles from the core split -> no HBM-side padding). ----
    global_tile = c * n_inner + i
    row_ids = global_tile * tile_s + jax.lax.broadcasted_iota(jnp.int32, (tile_s, 1), 0)
    valid = row_ids < S

    zw = jnp.where(valid, z_words, 0.0)
    # NOTE: torch uses raw exp() (no max shift) for the subdoc softmax -> reproduced.
    # Large |z_words| can overflow to inf exactly as in the PyTorch module.
    e2 = jnp.where(valid, jnp.exp(temp_subdocs * zw), 0.0)

    # ---- Segment (subdoc) pooling: per-group numerator / denominator. ----
    # TODO(synk): for very large n_groups (G_pad >> 128) this one-hot scatter is
    # O(tile_s * G_pad); emit z_words lane-dense instead and segment_sum in XLA.
    gid = gid_ref[...]                                             # (tile_s, 1) int32
    iota_g = jax.lax.broadcasted_iota(jnp.int32, (tile_s, G_pad), 1)
    onehot = (gid == iota_g).astype(jnp.float32)
    num_acc[...] += jnp.sum(onehot * (zw * e2), axis=0, keepdims=True)
    den_acc[...] += jnp.sum(onehot * e2, axis=0, keepdims=True)

    @pl.when(i == n_inner - 1)
    def _():
        num_ref[...] = num_acc[...]
        den_ref[...] = den_acc[...]


def embedding_pooled_classifier(embeddings, subdoc_indices, attn_masks, n_groups,
                                weight, bias, temp_words, temp_subdocs,
                                tile_s=None):
    """Wrapper: tiny metadata packing + pallas_call. Never copies the embeddings."""
    S, T, E = embeddings.shape
    emb_dtype = embeddings.dtype
    itemsize = jnp.dtype(emb_dtype).itemsize

    # ---- Chip-aware VMEM limit / stream budget (layout-aware: E pads to 128 lanes). ----
    try:
        info = pltpu.get_tpu_info()
        vmem_cap = int(getattr(info, "vmem_capacity_bytes", 64 << 20))
    except Exception:
        vmem_cap = 64 << 20
    # 64 MiB scoped limit on 128 MiB chips (v5e/v6e), 32 MiB on v7x (64 MiB physical).
    vmem_limit = (64 << 20) if vmem_cap >= (128 << 20) else (32 << 20)
    stream_budget = (8 << 20) if vmem_limit >= (64 << 20) else (6 << 20)

    per_row_vmem = _round_up(T, 8) * _round_up(E, 128) * itemsize
    if tile_s is None:
        tile_s = stream_budget // (2 * per_row_vmem)            # double-buffered stream
        tile_s = max(8, min(tile_s, _round_up(S, 8)))
        tile_s = max(8, (tile_s // 128 * 128) if tile_s >= 128 else (tile_s // 8 * 8))
    tile_s = int(max(8, (tile_s // 8) * 8))

    # Row chunk for the in-kernel E-reduction (bounds the f32 temporaries).
    chunk = 8
    for cand in (256, 128, 64, 32, 16, 8):
        if tile_s % cand == 0:
            chunk = cand
            break

    # ---- Grid: (core split, S tiles). No HBM padding: ragged / overflow tiles are
    #      masked in-kernel; overflow block indices are clamped in the index_map. ----
    n_tiles = pl.cdiv(S, tile_s)
    n_core = 2 if n_tiles >= 2 else 1     # v7x: 2 TensorCores; harmless on 1-TC chips
    n_inner = pl.cdiv(n_tiles, n_core)
    last_tile = n_tiles - 1

    G_pad = _round_up(max(n_groups, 1), 128)

    # ---- Tiny host-side packing (never touches the embedding tensor). ----
    mask_bias = jnp.where(attn_masks, 0.0, -1e30).astype(jnp.bfloat16)      # (S, T)
    gid = subdoc_indices.astype(jnp.int32).reshape(S, 1)                     # (S, 1)
    w_row = weight.reshape(1, E).astype(jnp.float32)                         # lane-dense
    params = jnp.array([bias, temp_words, temp_subdocs], dtype=jnp.float32)

    def _tile(c, i):
        return jnp.minimum(c * n_inner + i, last_tile)     # clamp overflow tiles

    kernel = functools.partial(
        _classifier_kernel, S=S, n_inner=n_inner, chunk=chunk,
        # bf16 multiply halves VALU work on v6e/v7x; taken only when the input is
        # bf16 (v5e has no bf16 VPU but is deeply HBM-bound there anyway).
        bf16_mul=(emb_dtype == jnp.bfloat16))

    bytes_accessed = (S * T * E * itemsize            # embedding stream
                      + S * T * 2 + S * 4             # bf16 mask bias + group ids
                      + 2 * n_core * G_pad * 4)       # num/den outputs
    cost = pl.CostEstimate(flops=2 * S * T * E + 8 * S * T,
                           transcendentals=S * T + S,
                           bytes_accessed=bytes_accessed)

    num, den = pl.pallas_call(
        kernel,
        out_shape=(jax.ShapeDtypeStruct((n_core, G_pad), jnp.float32),
                   jax.ShapeDtypeStruct((n_core, G_pad), jnp.float32)),
        grid_spec=pltpu.PrefetchScalarGridSpec(
            num_scalar_prefetch=0,
            grid=(n_core, n_inner),
            in_specs=[
                pl.BlockSpec((tile_s, T, E), lambda c, i: (_tile(c, i), 0, 0)),  # embeddings
                pl.BlockSpec((1, E), lambda c, i: (0, 0)),                        # weight
                pl.BlockSpec((tile_s, T), lambda c, i: (_tile(c, i), 0)),         # mask bias
                pl.BlockSpec((tile_s, 1), lambda c, i: (_tile(c, i), 0)),         # group ids
                pl.BlockSpec(memory_space=pltpu.MemorySpace.SMEM),                # scalars
            ],
            out_specs=[
                pl.BlockSpec((1, G_pad), lambda c, i: (c, 0)),                    # numerator
                pl.BlockSpec((1, G_pad), lambda c, i: (c, 0)),                    # denominator
            ],
            scratch_shapes=[
                pltpu.VMEM((tile_s, T), jnp.float32),      # z logits for this tile
                pltpu.VMEM((1, G_pad), jnp.float32),       # per-group numerator acc
                pltpu.VMEM((1, G_pad), jnp.float32),       # per-group denominator acc
            ],
        ),
        compiler_params=pltpu.CompilerParams(
            dimension_semantics=("parallel", "arbitrary"),
            vmem_limit_bytes=vmem_limit,
        ),
        cost_estimate=cost,
    )(embeddings, w_row, mask_bias, gid, params)

    # Cross-core combine + a single divide per group (no NaN on padded lanes).
    num = jnp.sum(num, axis=0)[:n_groups]
    den = jnp.sum(den, axis=0)[:n_groups]
    return num / den


def _reference_forward(embeddings, subdoc_indices, attn_masks, n_groups,
                       weight, bias, temp_words, temp_subdocs):
    """Pure-JAX reference mirroring the PyTorch module."""
    z = jnp.einsum('ste,oe->sto', embeddings.astype(jnp.float32), weight,
                   precision=jax.lax.Precision.HIGHEST)[..., 0] + bias
    h = temp_words * z
    h = jnp.where(attn_masks, h, -jnp.inf)
    sm = jax.nn.softmax(h, axis=1)
    z_words = jnp.sum(z * sm, axis=1)                                  # (S,)

    h2_exp = jnp.exp(temp_subdocs * z_words)
    seg = jax.ops.segment_sum(h2_exp, subdoc_indices, num_segments=n_groups)
    sm2 = h2_exp / seg[subdoc_indices]
    return jax.ops.segment_sum(z_words * sm2, subdoc_indices, num_segments=n_groups)


if __name__ == "__main__":
    S, T, E = 8, 16, 32          # subdocs, tokens per subdoc, embedding size
    n_labels = 1
    key = jax.random.PRNGKey(0)
    k_emb, k_w, k_b, k_mask, k_emb2, k_mask2 = jax.random.split(key, 6)

    embeddings = jax.random.normal(k_emb, (S, T, E), dtype=jnp.float32)

    # Deterministic parameter init (shapes from __init__):
    #   Linear(E, 1): xavier_uniform_(gain=0.01) weight, default uniform bias.
    gain = 0.01
    bound_w = gain * (6.0 / (E + n_labels)) ** 0.5
    weight = jax.random.uniform(k_w, (n_labels, E), jnp.float32, -bound_w, bound_w)
    bound_b = 1.0 / (E ** 0.5)
    bias = float(jax.random.uniform(k_b, (), jnp.float32, -bound_b, bound_b))
    temp_words = 1.0     # ParametricSoftmaxPool(temperature_init=1)
    temp_subdocs = 1.0

    # Attention mask (ensure each subdoc has at least one valid token).
    attn_masks = jax.random.bernoulli(k_mask, 0.7, (S, T))
    attn_masks = attn_masks.at[:, 0].set(True)

    # Sorted group indices (segment_coo assumes sorted indices): 3 documents.
    subdoc_indices = jnp.array([0, 0, 0, 1, 1, 2, 2, 2], dtype=jnp.int32)
    n_groups = 3

    out = embedding_pooled_classifier(embeddings, subdoc_indices, attn_masks,
                                      n_groups, weight, bias, temp_words, temp_subdocs)
    out = jax.block_until_ready(out)
    ref = _reference_forward(embeddings, subdoc_indices, attn_masks,
                             n_groups, weight, bias, temp_words, temp_subdocs)
    assert out.shape == (n_groups,)
    assert jnp.allclose(out, ref, rtol=2e-3, atol=2e-3), (out, ref)

    # --- bf16 embeddings: half the HBM traffic; exercises the bf16 multiply path. ---
    emb_bf16 = embeddings.astype(jnp.bfloat16)
    out_bf16 = jax.block_until_ready(
        embedding_pooled_classifier(emb_bf16, subdoc_indices, attn_masks,
                                    n_groups, weight, bias, temp_words, temp_subdocs))
    ref_bf16 = _reference_forward(emb_bf16.astype(jnp.float32), subdoc_indices,
                                  attn_masks, n_groups, weight, bias,
                                  temp_words, temp_subdocs)
    assert jnp.allclose(out_bf16, ref_bf16, rtol=3e-2, atol=2e-3), (out_bf16, ref_bf16)

    # --- Ragged S (not a multiple of the tile), multi-tile, 2-way core split:
    #     exercises the no-padding path (clamped overflow tile + in-kernel row mask). ---
    S2, n_groups2 = 37, 5
    sizes = [8, 8, 8, 8, 5]
    subdoc_indices2 = jnp.array(
        [g for g, n in enumerate(sizes) for _ in range(n)], dtype=jnp.int32)
    embeddings2 = jax.random.normal(k_emb2, (S2, T, E), dtype=jnp.float32)
    attn_masks2 = jax.random.bernoulli(k_mask2, 0.7, (S2, T)).at[:, 0].set(True)
    out2 = jax.block_until_ready(
        embedding_pooled_classifier(embeddings2, subdoc_indices2, attn_masks2,
                                    n_groups2, weight, bias, temp_words,
                                    temp_subdocs, tile_s=8))
    ref2 = _reference_forward(embeddings2, subdoc_indices2, attn_masks2,
                              n_groups2, weight, bias, temp_words, temp_subdocs)
    assert out2.shape == (n_groups2,)
    assert jnp.allclose(out2, ref2, rtol=2e-3, atol=2e-3), (out2, ref2)

    print("KERNEL_OK")
</pallas_src>

<mosaic_0001>
module attributes {stable_mosaic.version = 11 : i64} {
  func.func @_classifier_kernel(%arg0: i32, %arg1: i32, %arg2: memref<8x16x32xf32, #tpu.memory_space<vmem>>, %arg3: memref<1x32xf32, #tpu.memory_space<vmem>>, %arg4: memref<8x16xbf16, #tpu.memory_space<vmem>>, %arg5: memref<8x1xi32, #tpu.memory_space<vmem>>, %arg6: memref<3xf32, #tpu.memory_space<smem>>, %arg7: memref<1x128xf32, #tpu.memory_space<vmem>>, %arg8: memref<1x128xf32, #tpu.memory_space<vmem>>, %arg9: memref<8x16xf32, #tpu.memory_space<vmem>>, %arg10: memref<1x128xf32, #tpu.memory_space<vmem>>, %arg11: memref<1x128xf32, #tpu.memory_space<vmem>>) attributes {dimension_semantics = [#tpu.dimension_semantics<parallel>, #tpu.dimension_semantics<arbitrary>], iteration_bounds = array<i64: 1, 1>, scalar_prefetch = 0 : i64, scratch_operands = 3 : i64, tpu.core_type = #tpu.core_type<tc>, window_params = [{transform_indices = @transform_0, window_bounds = array<i64: 8, 16, 32>}, {pipeline_mode = #tpu.pipeline_mode<synchronous>, transform_indices = @transform_1, window_bounds = array<i64: 1, 32>}, {transform_indices = @transform_2, window_bounds = array<i64: 8, 16>}, {transform_indices = @transform_3, window_bounds = array<i64: 8, 1>}, {transform_indices = @transform_4, window_bounds = array<i64: 3>}, {transform_indices = @transform_5, window_bounds = array<i64: 1, 128>}, {transform_indices = @transform_6, window_bounds = array<i64: 1, 128>}]} {
    %c0 = arith.constant 0 : index
    %0 = memref.load %arg6[%c0] : memref<3xf32, #tpu.memory_space<smem>>
    %c1 = arith.constant 1 : index
    %1 = memref.load %arg6[%c1] : memref<3xf32, #tpu.memory_space<smem>>
    %c2 = arith.constant 2 : index
    %2 = memref.load %arg6[%c2] : memref<3xf32, #tpu.memory_space<smem>>
    %c0_i32 = arith.constant 0 : i32
    %3 = arith.cmpi eq, %arg1, %c0_i32 : i32
    %4 = arith.extui %3 : i1 to i32
    %c0_i32_0 = arith.constant 0 : i32
    %5 = arith.cmpi ne, %4, %c0_i32_0 : i32
    scf.if %5 {
      %cst_33 = arith.constant 0.000000e+00 : f32
      %77 = vector.broadcast %cst_33 : f32 to vector<1x128xf32>
      %c0_34 = arith.constant 0 : index
      %c0_35 = arith.constant 0 : index
      %78 = vector.load %arg10[%c0_34, %c0_35] : memref<1x128xf32, #tpu.memory_space<vmem>>, vector<1x128xf32>
      tpu.vector_store %arg10[%c0_34, %c0_35], %77 {strides = array<i32>} : memref<1x128xf32, #tpu.memory_space<vmem>>, vector<1x128xf32>,
      %cst_36 = arith.constant 0.000000e+00 : f32
      %79 = vector.broadcast %cst_36 : f32 to vector<1x128xf32>
      %c0_37 = arith.constant 0 : index
      %c0_38 = arith.constant 0 : index
      %80 = vector.load %arg11[%c0_37, %c0_38] : memref<1x128xf32, #tpu.memory_space<vmem>>, vector<1x128xf32>
      tpu.vector_store %arg11[%c0_37, %c0_38], %79 {strides = array<i32>} : memref<1x128xf32, #tpu.memory_space<vmem>>, vector<1x128xf32>,
    } else {
    }
    %c0_1 = arith.constant 0 : index
    %c0_2 = arith.constant 0 : index
    %6 = vector.load %arg3[%c0_1, %c0_2] : memref<1x32xf32, #tpu.memory_space<vmem>>, vector<1x32xf32>
    %7 = vector.shape_cast %6 : vector<1x32xf32> to vector<1x1x32xf32>
    %c0_i32_3 = arith.constant 0 : i32
    %c8_i32 = arith.constant 8 : i32
    %8 = arith.muli %c0_i32_3, %c8_i32 : i32
    %9 = tpu.assume_multiple %8, 8 : i32
    %10 = arith.index_cast %9 : i32 to index
    %c0_4 = arith.constant 0 : index
    %c0_5 = arith.constant 0 : index
    %11 = vector.load %arg2[%10, %c0_4, %c0_5] : memref<8x16x32xf32, #tpu.memory_space<vmem>>, vector<8x16x32xf32>
    %12 = vector.broadcast %7 : vector<1x1x32xf32> to vector<8x16x32xf32>
    %13 = arith.mulf %11, %12 : vector<8x16x32xf32>
    %cst = arith.constant dense<0.000000e+00> : vector<8x16xf32>
    %14 = vector.multi_reduction <add>, %13, %cst [2] : vector<8x16x32xf32> to vector<8x16xf32>
    %15 = vector.broadcast %0 : f32 to vector<8x16xf32>
    %16 = arith.addf %14, %15 : vector<8x16xf32>
    %17 = arith.index_cast %9 : i32 to index
    %c0_6 = arith.constant 0 : index
    %18 = vector.load %arg9[%17, %c0_6] : memref<8x16xf32, #tpu.memory_space<vmem>>, vector<8x16xf32>
    tpu.vector_store %arg9[%17, %c0_6], %16 {strides = array<i32>} : memref<8x16xf32, #tpu.memory_space<vmem>>, vector<8x16xf32>,
    %c1_i32 = arith.constant 1 : i32
    %c0_7 = arith.constant 0 : index
    %c0_8 = arith.constant 0 : index
    %19 = vector.load %arg9[%c0_7, %c0_8] : memref<8x16xf32, #tpu.memory_space<vmem>>, vector<8x16xf32>
    %20 = vector.broadcast %1 : f32 to vector<8x16xf32>
    %21 = arith.mulf %20, %19 : vector<8x16xf32>
    %c0_9 = arith.constant 0 : index
    %c0_10 = arith.constant 0 : index
    %22 = vector.load %arg4[%c0_9, %c0_10] : memref<8x16xbf16, #tpu.memory_space<vmem>>, vector<8x16xbf16>
    %23 = arith.extf %22 : vector<8x16xbf16> to vector<8x16xf32>
    %24 = arith.addf %21, %23 : vector<8x16xf32>
    %cst_11 = arith.constant dense<0xFF800000> : vector<8xf32>
    %25 = vector.multi_reduction <maximumf>, %24, %cst_11 [1] : vector<8x16xf32> to vector<8xf32>
    %26 = vector.shape_cast %25 : vector<8xf32> to vector<8x1xf32>
    %27 = vector.broadcast %26 : vector<8x1xf32> to vector<8x16xf32>
    %28 = arith.subf %24, %27 : vector<8x16xf32>
    %29 = math.exp %28 : vector<8x16xf32>
    %cst_12 = arith.constant dense<0.000000e+00> : vector<8xf32>
    %30 = vector.multi_reduction <add>, %29, %cst_12 [1] : vector<8x16xf32> to vector<8xf32>
    %31 = vector.shape_cast %30 : vector<8xf32> to vector<8x1xf32>
    %32 = tpu.reciprocal %31 : vector<8x1xf32> -> vector<8x1xf32>
    %33 = vector.broadcast %32 : vector<8x1xf32> to vector<8x16xf32>
    %34 = arith.mulf %29, %33 : vector<8x16xf32>
    %35 = arith.mulf %19, %34 : vector<8x16xf32>
    %cst_13 = arith.constant dense<0.000000e+00> : vector<8xf32>
    %36 = vector.multi_reduction <add>, %35, %cst_13 [1] : vector<8x16xf32> to vector<8xf32>
    %37 = vector.shape_cast %36 : vector<8xf32> to vector<8x1xf32>
    %c1_i32_14 = arith.constant 1 : i32
    %38 = arith.muli %arg0, %c1_i32_14 : i32
    %39 = arith.addi %38, %arg1 : i32
    %c8_i32_15 = arith.constant 8 : i32
    %40 = arith.muli %39, %c8_i32_15 : i32
    %41 = tpu.iota {dimensions = array<i32: 0>} : vector<8x1xi32>
    %42 = vector.broadcast %40 : i32 to vector<8x1xi32>
    %43 = arith.addi %42, %41 : vector<8x1xi32>
    %c8_i32_16 = arith.constant 8 : i32
    %44 = vector.broadcast %c8_i32_16 : i32 to vector<8x1xi32>
    %45 = arith.cmpi slt, %43, %44 : vector<8x1xi32>
    %cst_17 = arith.constant 0.000000e+00 : f32
    %46 = vector.broadcast %cst_17 : f32 to vector<8x1xf32>
    %47 = arith.select %45, %37, %46 : vector<8x1xi1>, vector<8x1xf32>
    %48 = vector.broadcast %2 : f32 to vector<8x1xf32>
    %49 = arith.mulf %48, %47 : vector<8x1xf32>
    %50 = math.exp %49 : vector<8x1xf32>
    %cst_18 = arith.constant 0.000000e+00 : f32
    %51 = vector.broadcast %cst_18 : f32 to vector<8x1xf32>
    %52 = arith.select %45, %50, %51 : vector<8x1xi1>, vector<8x1xf32>
    %c0_19 = arith.constant 0 : index
    %c0_20 = arith.constant 0 : index
    %53 = vector.load %arg5[%c0_19, %c0_20] : memref<8x1xi32, #tpu.memory_space<vmem>>, vector<8x1xi32>
    %54 = tpu.iota {dimensions = array<i32: 1>} : vector<8x128xi32>
    %55 = vector.broadcast %53 : vector<8x1xi32> to vector<8x128xi32>
    %56 = arith.cmpi eq, %55, %54 : vector<8x128xi32>
    %57 = arith.extui %56 : vector<8x128xi1> to vector<8x128xi32>
    %58 = arith.sitofp %57 : vector<8x128xi32> to vector<8x128xf32>
    %c0_21 = arith.constant 0 : index
    %c0_22 = arith.constant 0 : index
    %59 = vector.load %arg10[%c0_21, %c0_22] : memref<1x128xf32, #tpu.memory_space<vmem>>, vector<1x128xf32>
    %60 = arith.mulf %47, %52 : vector<8x1xf32>
    %61 = vector.broadcast %60 : vector<8x1xf32> to vector<8x128xf32>
    %62 = arith.mulf %58, %61 : vector<8x128xf32>
    %cst_23 = arith.constant dense<0.000000e+00> : vector<128xf32>
    %63 = vector.multi_reduction <add>, %62, %cst_23 [0] : vector<8x128xf32> to vector<128xf32>
    %64 = vector.shape_cast %63 : vector<128xf32> to vector<1x128xf32>
    %65 = arith.addf %59, %64 : vector<1x128xf32>
    %c0_24 = arith.constant 0 : index
    %c0_25 = arith.constant 0 : index
    %66 = vector.load %arg10[%c0_24, %c0_25] : memref<1x128xf32, #tpu.memory_space<vmem>>, vector<1x128xf32>
    tpu.vector_store %arg10[%c0_24, %c0_25], %65 {strides = array<i32>} : memref<1x128xf32, #tpu.memory_space<vmem>>, vector<1x128xf32>,
    %c0_26 = arith.constant 0 : index
    %c0_27 = arith.constant 0 : index
    %67 = vector.load %arg11[%c0_26, %c0_27] : memref<1x128xf32, #tpu.memory_space<vmem>>, vector<1x128xf32>
    %68 = vector.broadcast %52 : vector<8x1xf32> to vector<8x128xf32>
    %69 = arith.mulf %58, %68 : vector<8x128xf32>
    %cst_28 = arith.constant dense<0.000000e+00> : vector<128xf32>
    %70 = vector.multi_reduction <add>, %69, %cst_28 [0] : vector<8x128xf32> to vector<128xf32>
    %71 = vector.shape_cast %70 : vector<128xf32> to vector<1x128xf32>
    %72 = arith.addf %67, %71 : vector<1x128xf32>
    %c0_29 = arith.constant 0 : index
    %c0_30 = arith.constant 0 : index
    %73 = vector.load %arg11[%c0_29, %c0_30] : memref<1x128xf32, #tpu.memory_space<vmem>>, vector<1x128xf32>
    tpu.vector_store %arg11[%c0_29, %c0_30], %72 {strides = array<i32>} : memref<1x128xf32, #tpu.memory_space<vmem>>, vector<1x128xf32>,
    %c0_i32_31 = arith.constant 0 : i32
    %74 = arith.cmpi eq, %arg1, %c0_i32_31 : i32
    %75 = arith.extui %74 : i1 to i32
    %c0_i32_32 = arith.constant 0 : i32
    %76 = arith.cmpi ne, %75, %c0_i32_32 : i32
    scf.if %76 {
      %c0_33 = arith.constant 0 : index
      %c0_34 = arith.constant 0 : index
      %77 = vector.load %arg10[%c0_33, %c0_34] : memref<1x128xf32, #tpu.memory_space<vmem>>, vector<1x128xf32>
      %c0_35 = arith.constant 0 : index
      %c0_36 = arith.constant 0 : index
      %78 = vector.load %arg7[%c0_35, %c0_36] : memref<1x128xf32, #tpu.memory_space<vmem>>, vector<1x128xf32>
      tpu.vector_store %arg7[%c0_35, %c0_36], %77 {strides = array<i32>} : memref<1x128xf32, #tpu.memory_space<vmem>>, vector<1x128xf32>,
      %c0_37 = arith.constant 0 : index
      %c0_38 = arith.constant 0 : index
      %79 = vector.load %arg11[%c0_37, %c0_38] : memref<1x128xf32, #tpu.memory_space<vmem>>, vector<1x128xf32>
      %c0_39 = arith.constant 0 : index
      %c0_40 = arith.constant 0 : index
      %80 = vector.load %arg8[%c0_39, %c0_40] : memref<1x128xf32, #tpu.memory_space<vmem>>, vector<1x128xf32>
      tpu.vector_store %arg8[%c0_39, %c0_40], %79 {strides = array<i32>} : memref<1x128xf32, #tpu.memory_space<vmem>>, vector<1x128xf32>,
    } else {
    }
    return
  }
  func.func @transform_0(%arg0: i32, %arg1: i32) -> (i32, i32, i32) {
    %c1_i32 = arith.constant 1 : i32
    %0 = arith.muli %arg0, %c1_i32 : i32
    %1 = arith.addi %0, %arg1 : i32
    %c0_i32 = arith.constant 0 : i32
    %2 = arith.minsi %1, %c0_i32 : i32
    %c0_i32_0 = arith.constant 0 : i32
    %c0_i32_1 = arith.constant 0 : i32
    %c0_i32_2 = arith.constant 0 : i32
    return %2, %c0_i32_0, %c0_i32_1 : i32, i32, i32
  }
  func.func @transform_1(%arg0: i32, %arg1: i32) -> (i32, i32) {
    %c0_i32 = arith.constant 0 : i32
    %c0_i32_0 = arith.constant 0 : i32
    %c0_i32_1 = arith.constant 0 : i32
    return %c0_i32, %c0_i32_0 : i32, i32
  }
  func.func @transform_2(%arg0: i32, %arg1: i32) -> (i32, i32) {
    %c1_i32 = arith.constant 1 : i32
    %0 = arith.muli %arg0, %c1_i32 : i32
    %1 = arith.addi %0, %arg1 : i32
    %c0_i32 = arith.constant 0 : i32
    %2 = arith.minsi %1, %c0_i32 : i32
    %c0_i32_0 = arith.constant 0 : i32
    %c0_i32_1 = arith.constant 0 : i32
    return %2, %c0_i32_0 : i32, i32
  }
  func.func @transform_3(%arg0: i32, %arg1: i32) -> (i32, i32) {
    %c1_i32 = arith.constant 1 : i32
    %0 = arith.muli %arg0, %c1_i32 : i32
    %1 = arith.addi %0, %arg1 : i32
    %c0_i32 = arith.constant 0 : i32
    %2 = arith.minsi %1, %c0_i32 : i32
    %c0_i32_0 = arith.constant 0 : i32
    %c0_i32_1 = arith.constant 0 : i32
    return %2, %c0_i32_0 : i32, i32
  }
  func.func @transform_4(%arg0: i32, %arg1: i32) -> i32 {
    %c0_i32 = arith.constant 0 : i32
    %c0_i32_0 = arith.constant 0 : i32
    return %c0_i32 : i32
  }
  func.func @transform_5(%arg0: i32, %arg1: i32) -> (i32, i32) {
    %c0_i32 = arith.constant 0 : i32
    %c0_i32_0 = arith.constant 0 : i32
    return %arg0, %c0_i32 : i32, i32
  }
  func.func @transform_6(%arg0: i32, %arg1: i32) -> (i32, i32) {
    %c0_i32 = arith.constant 0 : i32
    %c0_i32_0 = arith.constant 0 : i32
    return %arg0, %c0_i32 : i32, i32
  }
}

</mosaic_0001>

<bundles_post_ra>
// kernel: tpu_custom_call.1
= control target key start
LH: loop header
LB: loop body
LE: loop exit
PB: predicated region body
PF: predicated region fallthrough
CT: control target
= control target key end

     0   :  { %12 = vsyncpa [#allocation6], 0  ;;  %s649_s0 = inlined_call_operand.hbm [shape: f32[8,16,32], index: 0, kind: input, shape index: {}]   ;;  %s650_s1 = inlined_call_operand.vmem [shape: f32[1,32], index: 1, kind: input, shape index: {}]   ;;  %s651_s2 = inlined_call_operand.vmem [shape: bf16[8,16], index: 2, kind: input, shape index: {}]   ;;  %s652_s3 = inlined_call_operand.vmem [shape: s32[8,1], index: 3, kind: input, shape index: {}]   ;;  %s653_s4 = inlined_call_operand.vmem [shape: f32[3], index: 4, kind: input, shape index: {}]   ;;  %s654_s5 = inlined_call_operand.hbm [shape: f32[1,128], index: 5, kind: output, shape index: {0}]   ;;  %s655_s6 = inlined_call_operand.hbm [shape: f32[1,128], index: 6, kind: output, shape index: {1}]  }
   0x1   :  { %13 = vsyncpa [#allocation8], 0 }
   0x2   :  { %14 = vsyncpa [#allocation7], 0 }
   0x3   :  { %15 = vsyncpa [#allocation12], 0  ;;  %s27_s23 = sshll.u32 %s649_s0, 4  ;;  %s534_s24 = smov [#allocation5]   ;;  %s28_s23 = int_to_ptr.hbm [resolvable:$true] %s27_s23 }
   0x4   :  { %s29_s25 = sshll.u32 %s534_s24, 4  ;;  %s67_s28 = sshll.u32 %s653_s4, 4  ;;  %s30_s25 = int_to_ptr.vmem [resolvable:$true] %s29_s25  ;;  %s68_s28 = int_to_ptr.vmem [resolvable:$true] %s67_s28 }
   0x5   :  { %s535_s29 = smov 128   ;;  %s536_s30 = smov 8  }
   0x6   :  { %35 = dma.hbm_to_vmem [thread:$0]  %s28_s23, 2048, %s30_s25, [#allocation6], %s535_s29, %s535_s29, %s536_s30  }
   0x7   :  { %s537_s7 = smov [#allocation9]  }
   0x8   :  { %70 = dma.vmem_to_smem %s68_s28, 16, %s537_s7, [#allocation8]  }
   0x9   :  { %526 = dma.done.wait [#allocation6], 2048  }
   0xa   :  { %527 = vsyncadd [#allocation6], 4294965248 }
   0xb   :  { %528 = dma.done.wait [#allocation8], 16  }
   0xc   :  { %529 = vsyncadd [#allocation8], 4294967280 }
   0xd   :  { %79 = sfence }
   0xe   :  { %v134_v0 = vld [vmem:[#allocation5 + $0x20] sm:$0xff]  ;;  %v435_v1 = vld [vmem:[%s650_s1] ss:$0 sm:$0xff]  ;;  %vm165_vm0 = vcmask 261120   ;;  %v135_v7 = vld [vmem:[#allocation5 + $0x28] sm:$0xff]  ;;  %s118_s1 = sld [smem:[#allocation9]]  ;;  %v247_v58 = vlaneseq }
   0xf   :  { %v132_v2 = vld [vmem:[#allocation5 + $0x10] sm:$0xff]  ;;  %v130_v3 = vld [vmem:[#allocation5] sm:$0xff]  ;;  %v153_v4 = vmul.f32 %v435_v1, %v134_v0  ;;  %v133_v8 = vld [vmem:[#allocation5 + $0x18] sm:$0xff]  ;;  %v154_v13 = vmul.f32 %v435_v1, %v135_v7  ;;  %vm252_vm1 = vcmask 130112   ;;  %vm275_vm2 = vcmask 1041409   ;;  %s422_s4 = sld [smem:[#allocation9 + $0x1]] }
  0x10   :  { %v151_v5 = vmul.f32 %v435_v1, %v132_v2  ;;  %v149_v6 = vmul.f32 %v435_v1, %v130_v3  ;;  %v131_v12 = vld [vmem:[#allocation5 + $0x8] sm:$0xff]  ;;  %v152_v14 = vmul.f32 %v435_v1, %v133_v8  ;;  %v137_v19 = vld [vmem:[#allocation5 + $0x38] sm:$0xff]  ;;  %v138_v20 = vld [vmem:[#allocation5 + $0x40] sm:$0xff]  ;;  %v602_v59 = vand.u32 127, %v247_v58  ;;  %s392_s16 = sshll.u32 %s655_s6, 4  ;;  %s541_s17 = smov [#allocation10]   ;;  %s393_s16 = int_to_ptr.hbm [resolvable:$true] %s392_s16 }
  0x11   :  { %v178_v9 = vsel %vm165_vm0, %v153_v4, 0.0  ;;  %v150_v15 = vmul.f32 %v435_v1, %v131_v12  ;;  %v181_v16 = vsel %vm165_vm0, %v154_v13, 0.0  ;;  %v136_v21 = vld [vmem:[#allocation5 + $0x30] sm:$0xff]  ;;  %v156_v22 = vmul.f32 %v435_v1, %v137_v19  ;;  %v141_v29 = vld [vmem:[#allocation5 + $0x58] sm:$0xff]  ;;  %v139_v30 = vld [vmem:[#allocation5 + $0x48] sm:$0xff]  ;;  %s379_s18 = sshll.u32 %s541_s17, 4  ;;  %s380_s18 = int_to_ptr.vmem [resolvable:$true] %s379_s18 }
  0x12   :  { %v172_v10 = vsel %vm165_vm0, %v151_v5, 0.0  ;;  %v166_v11 = vsel %vm165_vm0, %v149_v6, 0.0  ;;  %179 = vadd.xlane.f32.xlu2 %v178_v9  ;;  %v175_v17 = vsel %vm165_vm0, %v152_v14, 0.0  ;;  %v157_v23 = vmul.f32 %v435_v1, %v138_v20  ;;  %v140_v28 = vld [vmem:[#allocation5 + $0x50] sm:$0xff]  ;;  %v143_v37 = vld [vmem:[#allocation5 + $0x68] sm:$0xff]  ;;  %v142_v39 = vld [vmem:[#allocation5 + $0x60] sm:$0xff] }
  0x13   :  { %173 = vadd.xlane.f32.xlu1 %v172_v10  ;;  %167 = vadd.xlane.f32.xlu0 %v166_v11  ;;  %v169_v18 = vsel %vm165_vm0, %v150_v15, 0.0  ;;  %v155_v24 = vmul.f32 %v435_v1, %v136_v21  ;;  %v187_v25 = vsel %vm165_vm0, %v156_v22, 0.0  ;;  %v159_v31 = vmul.f32 %v435_v1, %v140_v28  ;;  %v144_v38 = vld [vmem:[#allocation5 + $0x70] sm:$0xff]  ;;  %v145_v46 = vld [vmem:[#allocation5 + $0x78] sm:$0xff]  ;;  %s381_s21 = sshll.u32 %s654_s5, 4  ;;  %s382_s21 = int_to_ptr.hbm [resolvable:$true] %s381_s21 }
  0x14   :  { %v190_v26 = vsel %vm165_vm0, %v157_v23, 0.0  ;;  %v160_v32 = vmul.f32 %v435_v1, %v141_v29  ;;  %v158_v33 = vmul.f32 %v435_v1, %v139_v30  ;;  %v162_v40 = vmul.f32 %v435_v1, %v143_v37 }
  0x15   :  { %v184_v27 = vsel %vm165_vm0, %v155_v24, 0.0  ;;  %v196_v34 = vsel %vm165_vm0, %v159_v31, 0.0  ;;  %v163_v41 = vmul.f32 %v435_v1, %v144_v38  ;;  %v161_v42 = vmul.f32 %v435_v1, %v142_v39 }
  0x16   :  { %v199_v35 = vsel %vm165_vm0, %v160_v32, 0.0  ;;  %v193_v36 = vsel %vm165_vm0, %v158_v33, 0.0  ;;  %v205_v43 = vsel %vm165_vm0, %v162_v40, 0.0  ;;  %v164_v47 = vmul.f32 %v435_v1, %v145_v46 }
  0x17   :  { %v208_v44 = vsel %vm165_vm0, %v163_v41, 0.0  ;;  %v202_v45 = vsel %vm165_vm0, %v161_v42, 0.0  ;;  %v214_v60 = vstv %s118_s1  ;;  %v605_v63 = vadd.s32 4294967288, %v602_v59 }
  0x18   :  { %v211_v48 = vsel %vm165_vm0, %v164_v47, 0.0  ;;  %vm277_vm3 = vcmask 1042434   ;;  %vm279_vm4 = vcmask 1043459   ;;  %vm281_vm5 = vcmask 1044484  }
  0x19   :  { %vm283_vm6 = vcmask 1045509   ;;  %vm285_vm7 = vcmask 1046534   ;;  %vm287_vm8 = vcmask 1047559   ;;  %vm290_vm9 = vcmask 130048  }
  0x1a   :  { %182 = vadd.xlane.f32.xlu2 %v181_v16 }
  0x1b   :  { %176 = vadd.xlane.f32.xlu1 %v175_v17  ;;  %170 = vadd.xlane.f32.xlu0 %v169_v18 }
  0x22   :  { %191 = vadd.xlane.f32.xlu2 %v190_v26 }
  0x23   :  { %188 = vadd.xlane.f32.xlu1 %v187_v25  ;;  %185 = vadd.xlane.f32.xlu0 %v184_v27 }
  0x2a   :  { %200 = vadd.xlane.f32.xlu2 %v199_v35 }
  0x2b   :  { %197 = vadd.xlane.f32.xlu1 %v196_v34  ;;  %194 = vadd.xlane.f32.xlu0 %v193_v36 }
  0x32   :  { %209 = vadd.xlane.f32.xlu2 %v208_v44 }
  0x33   :  { %206 = vadd.xlane.f32.xlu1 %v205_v43  ;;  %203 = vadd.xlane.f32.xlu0 %v202_v45 }
  0x3b   :  { %212 = vadd.xlane.f32.xlu0 %v211_v48 }
  0x85   :  { %v180_v49 = vpop.xlane.xlu2 %179 }
  0x86   :  { %v174_v50 = vpop.xlane.xlu1 %173  ;;  %v168_v51 = vpop.xlane.xlu0 %167  ;;  %v219_v5 = vadd.f32 %v214_v60, %v180_v49 }
  0x87   :  { %v217_v62 = vadd.f32 %v214_v60, %v174_v50  ;;  %v215_v3 = vadd.f32 %v214_v60, %v168_v51 }
  0x88   :  { %v257_v16 = vperm.slane %v219_v5, %v602_v59 }
  0x89   :  { %v254_v6 = vperm.slane %v217_v62, %v602_v59  ;;  %v249_v12 = vperm.slane %v215_v3, %v602_v59 }
  0x8d   :  { %v183_v52 = vpop.xlane.xlu2 %182 }
  0x8e   :  { %v177_v53 = vpop.xlane.xlu1 %176  ;;  %v171_v54 = vpop.xlane.xlu0 %170  ;;  %v220_v7 = vadd.f32 %v214_v60, %v183_v52  ;;  %v295_v52 = vld [vmem:[%s651_s2] sm:$0xf]  ;;  %s423_s2 = sld [smem:[#allocation9 + $0x2]] }
  0x8f   :  { %v218_v0 = vadd.f32 %v214_v60, %v177_v53  ;;  %v216_v1 = vadd.f32 %v214_v60, %v171_v54  ;;  %v293_v53 = vstv %s422_s4  ;;  %v296_v54 = vunpack.c.l.bf16 %v295_v52 }
  0x90   :  { %v258_v17 = vperm.slane %v220_v7, %v605_v63 }
  0x91   :  { %v255_v8 = vperm.slane %v218_v0, %v605_v63  ;;  %v251_v9 = vperm.slane %v216_v1, %v605_v63  ;;  %v339_v1 = vld [vmem:[%s652_s3] sm:$0xff]  ;;  %s540_s3 = smov [#allocation11]  }
  0x92   :  { %v259_v30 = vsel %vm252_vm1, %v258_v17, %v257_v16  ;;  %v539_v17 = vmov 0.0   ;;  %s390_s13 = sshll.u32 %s540_s3, 4  ;;  %s391_s13 = int_to_ptr.vmem [resolvable:$true] %s390_s13 }
  0x93   :  { %v256_v18 = vsel %vm252_vm1, %v255_v8, %v254_v6  ;;  %v253_v19 = vsel %vm252_vm1, %v251_v9, %v249_v12  ;;  %125 = vst [vmem:[#allocation3] sm:$0x1] %v539_v17 }
  0x94   :  { %v276_v31 = vsel %vm275_vm2, %v256_v18, %v253_v19  ;;  %126 = vst [vmem:[#allocation4] sm:$0x1] %v539_v17  ;;  %v334_v18 = vstv %s423_s2 }
  0x95   :  { %v192_v57 = vpop.xlane.xlu2 %191  ;;  %v278_v39 = vsel %vm277_vm3, %v259_v30, %v276_v31 }
  0x96   :  { %v189_v55 = vpop.xlane.xlu1 %188  ;;  %v186_v56 = vpop.xlane.xlu0 %185  ;;  %v223_v13 = vadd.f32 %v214_v60, %v192_v57 }
  0x97   :  { %v222_v10 = vadd.f32 %v214_v60, %v189_v55  ;;  %v221_v11 = vadd.f32 %v214_v60, %v186_v56 }
  0x98   :  { %v263_v25 = vperm.slane %v223_v13, %v602_v59 }
  0x99   :  { %v261_v21 = vperm.slane %v222_v10, %v605_v63  ;;  %v260_v22 = vperm.slane %v221_v11, %v602_v59 }
  0x9b   :  { %v262_v32 = vsel %vm252_vm1, %v261_v21, %v260_v22 }
  0x9c   :  { %v280_v40 = vsel %vm279_vm4, %v262_v32, %v278_v39 }
  0x9d   :  { %v201_v4 = vpop.xlane.xlu2 %200 }
  0x9e   :  { %v198_v61 = vpop.xlane.xlu1 %197  ;;  %v195_v2 = vpop.xlane.xlu0 %194  ;;  %v226_v24 = vadd.f32 %v214_v60, %v201_v4 }
  0x9f   :  { %v224_v14 = vadd.f32 %v214_v60, %v195_v2  ;;  %v225_v23 = vadd.f32 %v214_v60, %v198_v61  ;;  %v538_v2 = vmov 0  }
  0xa0   :  { %v267_v34 = vperm.slane %v226_v24, %v605_v63  ;;  %433 = vset.pattern.permute.xlu1 %v538_v2  ;;  %434 = vset.pattern.permute.xlu0 %v538_v2 }
  0xa1   :  { %v264_v26 = vperm.slane %v224_v14, %v605_v63  ;;  %v266_v33 = vperm.slane %v225_v23, %v602_v59 }
  0xa3   :  { %v265_v36 = vsel %vm252_vm1, %v264_v26, %v263_v25  ;;  %v268_v43 = vsel %vm252_vm1, %v267_v34, %v266_v33 }
  0xa4   :  { %v282_v42 = vsel %vm281_vm5, %v265_v36, %v280_v40  ;;  %v346_v40 = vld [vmem:[#allocation3] sm:$0x1] }
  0xa5   :  { %v210_v29 = vpop.xlane.xlu2 %209  ;;  %v284_v48 = vsel %vm283_vm6, %v268_v43, %v282_v42 }
  0xa6   :  { %v207_v15 = vpop.xlane.xlu1 %206  ;;  %v204_v20 = vpop.xlane.xlu0 %203  ;;  %v229_v35 = vadd.f32 %v214_v60, %v210_v29 }
  0xa7   :  { %v228_v27 = vadd.f32 %v214_v60, %v207_v15  ;;  %v227_v28 = vadd.f32 %v214_v60, %v204_v20 }
  0xa8   :  { %v272_v44 = vperm.slane %v229_v35, %v602_v59 }
  0xa9   :  { %v270_v37 = vperm.slane %v228_v27, %v605_v63  ;;  %v269_v38 = vperm.slane %v227_v28, %v602_v59 }
  0xab   :  { %v271_v46 = vsel %vm252_vm1, %v270_v37, %v269_v38  ;;  %v357_v37 = vld [vmem:[#allocation4] sm:$0x1] }
  0xac   :  { %v286_v49 = vsel %vm285_vm7, %v271_v46, %v284_v48 }
  0xae   :  { %v213_v41 = vpop.xlane.xlu0 %212 }
  0xaf   :  { %v230_v45 = vadd.f32 %v214_v60, %v213_v41 }
  0xb1   :  { %v273_v47 = vperm.slane %v230_v45, %v605_v63 }
  0xb3   :  { %v274_v50 = vsel %vm252_vm1, %v273_v47, %v272_v44 }
  0xb4   :  { %v288_v51 = vsel %vm287_vm8, %v274_v50, %v286_v49 }
  0xb5   :  { %291 = vst.msk [vmem:[#allocation2] sm:$0xff] %vm290_vm9, %v288_v51 }
  0xbc   :  { %v292_v55 = vld [vmem:[#allocation2] sm:$0xff] }
  0xbd   :  { %v294_v56 = vmul.f32 %v293_v53, %v292_v55 }
  0xbf   :  { %v297_v57 = vadd.f32 %v296_v54, %v294_v56 }
  0xc1   :  { %v298_v58 = vsel %vm290_vm9, %v297_v57, -inf }
  0xc2   :  { %299 = vmax.xlane.f32.xlu1 %v298_v58 }
  0xdb   :  { %341 = vperm.xlu1 %433, %v339_v1  }
 0x135   :  { %v300_v60 = vpop.xlane.xlu1 %299 }
 0x136   :  { %v301_v61 = vsub.f32 %v297_v57, %v300_v60 }
 0x138   :  { %v302_v62 = vmul.f32 1.442695, %v301_v61 }
 0x13a   :  { %436 = vpow2.f32 %v302_v62 }
 0x140   :  { %v437_v63 = vpop.eup %436 }
 0x141   :  { %v304_v0 = vsel %vm290_vm9, %v437_v63, 0.0 }
 0x142   :  { %305 = vadd.xlane.f32.xlu2 %v304_v0 }
 0x14d   :  { %v342_v22 = vpop.permute.xlu1 %341 }
 0x14e   :  { %vm343_vm14 = vcmp.eq.s32.totalorder %v342_v22, %v602_v59 }
 0x14f   :  { %v424_v23 = vsel %vm343_vm14, 1.0, %v539_v17 }
 0x1b5   :  { %v306_v3 = vpop.xlane.xlu2 %305 }
 0x1b6   :  { %438 = vrcp.f32 %v306_v3  ;;  %v318_v7 = vand.u32 2147483648, %v306_v3  ;;  %v316_v9 = vand.u32 2147483647, %v306_v3  ;;  %vm312_vm11 = vweird.f32 %v306_v3 }
 0x1b8   :  { %v319_v11 = vor.u32 1.1754944e-38, %v318_v7  ;;  %vm317_vm13 = vcmp.eq.f32.partialorder %v316_v9, 8.507059e+37 }
 0x1bc   :  { %v439_v4 = vpop.eup %438 }
 0x1bd   :  { %v308_v5 = vmul.f32 %v439_v4, %v306_v3  ;;  %vm313_vm10 = vweird.f32 %v439_v4 }
 0x1be   :  { %vm314_vm12 = vmor %vm312_vm11, %vm313_vm10 }
 0x1bf   :  { %v309_v6 = vsub.f32 1.0, %v308_v5 }
 0x1c1   :  { %v310_v8 = vmul.f32 %v439_v4, %v309_v6 }
 0x1c3   :  { %v311_v10 = vadd.f32 %v439_v4, %v310_v8 }
 0x1c5   :  { %v315_v12 = vsel %vm314_vm12, %v439_v4, %v311_v10 }
 0x1c6   :  { %v320_v13 = vsel %vm317_vm13, %v319_v11, %v315_v12 }
 0x1c7   :  { %v321_v14 = vmul.f32 %v437_v63, %v320_v13 }
 0x1c9   :  { %v322_v15 = vmul.f32 %v321_v14, %v292_v55 }
 0x1cb   :  { %v323_v16 = vsel %vm290_vm9, %v322_v15, 0.0 }
 0x1cc   :  { %324 = vadd.xlane.f32.xlu0 %v323_v16 }
 0x23f   :  { %v325_v19 = vpop.xlane.xlu0 %324 }
 0x240   :  { %v335_v20 = vmul.f32 %v334_v18, %v325_v19 }
 0x242   :  { %v336_v21 = vmul.f32 1.442695, %v335_v20 }
 0x244   :  { %440 = vpow2.f32 %v336_v21 }
 0x24a   :  { %v441_v24 = vpop.eup %440 }
 0x24b   :  { %v347_v25 = vmul.f32 %v441_v24, %v325_v19  ;;  %v358_v26 = vmul.f32 %v441_v24, %v424_v23 }
 0x24d   :  { %v348_v27 = vmul.f32 %v424_v23, %v347_v25  ;;  %v359_v28 = vrot.slane %v358_v26, 4 }
 0x24f   :  { %v349_v29 = vrot.slane %v348_v27, 4  ;;  %v360_v30 = vadd.f32 %v359_v28, %v358_v26 }
 0x251   :  { %v350_v31 = vadd.f32 %v349_v29, %v348_v27  ;;  %v361_v32 = vrot.slane %v360_v30, 2 }
 0x253   :  { %v351_v33 = vrot.slane %v350_v31, 2  ;;  %v362_v34 = vadd.f32 %v361_v32, %v360_v30 }
 0x255   :  { %v352_v35 = vadd.f32 %v351_v33, %v350_v31  ;;  %v363_v36 = vrot.slane %v362_v34, 1 }
 0x257   :  { %v353_v38 = vrot.slane %v352_v35, 1  ;;  %v364_v39 = vadd.f32 %v363_v36, %v362_v34 }
 0x259   :  { %v354_v41 = vadd.f32 %v353_v38, %v352_v35  ;;  %v365_v59 = vadd.f32 %v364_v39, %v357_v37 }
 0x25b   :  { %v355_v42 = vadd.f32 %v354_v41, %v346_v40  ;;  %366 = vst [vmem:[#allocation4] sm:$0x1] %v365_v59 }
 0x25d   :  { %356 = vst [vmem:[#allocation3] sm:$0x1] %v355_v42 }
 0x262   :  { %v372_v43 = vld [vmem:[#allocation4] sm:$0x1] }
 0x263   :  { %373 = vst [vmem:[#allocation11] sm:$0x1] %v372_v43 }
 0x264   :  { %v370_v44 = vld [vmem:[#allocation3] sm:$0x1]  ;;  %395 = dma.vmem_to_hbm [thread:$0]  %s391_s13, 16, %s393_s16, [#allocation12]  }
 0x265   :  { %371 = vst [vmem:[#allocation10] sm:$0x1] %v370_v44 }
 0x266   :  { %384 = dma.vmem_to_hbm [thread:$0]  %s380_s18, 16, %s382_s21, [#allocation7]  }
 0x267   :  { %530 = dma.done.wait [#allocation7], 16  }
 0x268   :  { %531 = vsyncadd [#allocation7], 4294967280 }
 0x269   :  { %532 = dma.done.wait [#allocation12], 16  }
 0x26a   :  { %533 = vsyncadd [#allocation12], 4294967280 }
 0x26b   :  { %404 = vsyncpa [#allocation6], 1 }
 0x26c   :  { %405 = vsyncpa [#allocation7], 1 }
 0x26d   :  { %406 = vsyncpa [#allocation12], 1 }
 0x26e   :  { %407 = vsyncpa [#allocation8], 1 }

</bundles_post_ra>
